<compile_context>
chip_gen: v7x
topology: tpu7x:2x2x1
jax: 0.10.0
libtpu: 0.0.40
codegen_flags: <defaults>
</compile_context>

<pallas_src>
import jax
import jax.numpy as jnp
from jax import lax
from jax.experimental import pallas as pl
from jax.experimental.pallas import tpu as pltpu


# --------------------------------------------------------------------------- #
# Kernels
# --------------------------------------------------------------------------- #
def _moments_kernel(x_ref, sumx_ref, xtx_ref):
    """Accumulate sum(x) and x^T x over all row tiles (BN batch statistics)."""
    i = pl.program_id(0)

    @pl.when(i == 0)
    def _():
        sumx_ref[...] = jnp.zeros_like(sumx_ref)
        xtx_ref[...] = jnp.zeros_like(xtx_ref)

    x = x_ref[...].astype(jnp.float32)                          # (tile_m, Cin)
    sumx_ref[...] += jnp.sum(x, axis=0, keepdims=True)          # (1, Cin)
    # x.T @ x via transposed-LHS dot_general (Cin, Cin); K = tile_m on the MXU.
    xtx_ref[...] += lax.dot_general(
        x, x, (((0,), (0,)), ((), ())), preferred_element_type=jnp.float32)


def _fused_kernel(x_ref, w1t_ref, b1_ref, w2t_ref, b2_ref, o_ref):
    """relu(w1t @ x.T + b1) -> w2t @ (.) + b2, stored directly as (F, tile_n)."""
    x = x_ref[0].astype(jnp.float32)                            # (tile_n, Cin)
    # hT[f, n] = sum_c w1t[f, c] * x[n, c]   (BN already folded into w1t / b1)
    h = lax.dot_general(w1t_ref[...], x, (((1,), (1,)), ((), ())),
                        preferred_element_type=jnp.float32) + b1_ref[...]
    h = jnp.maximum(h, 0.0)                                     # ReLU, (F, tile_n)
    out = jnp.dot(w2t_ref[...], h,
                  preferred_element_type=jnp.float32) + b2_ref[...]
    o_ref[0] = out.astype(o_ref.dtype)                          # lane-dense NCL store


# --------------------------------------------------------------------------- #
# Wrapper
# --------------------------------------------------------------------------- #
def _pick_tile(total, cap=2048, align=128):
    """Largest legal tile: `total` itself if small, else a divisor that is a
    multiple of `align` (keeps BlockSpec (8,128) constraints), else full dim."""
    if total <= cap:
        return total
    start = cap - (cap % align)
    for t in range(start, align - 1, -align):
        if total % t == 0:
            return t
    return total  # single full-extent block is always a legal BlockSpec


def position_embedding_learned(xyz, params, *, eps=1e-5):
    """xyz: (B, N, Cin) float32 -> (B, num_pos_feats, N) float32 (PyTorch NCL)."""
    B, N, Cin = xyz.shape
    F = params["w1"].shape[1]
    M = B * N
    w1, b1 = params["w1"], params["b1"]
    gamma, beta = params["gamma"], params["beta"]
    w2, b2 = params["w2"], params["b2"]

    # ---------------- Pass 1: input moments for BatchNorm batch stats --------
    # TODO(synk): PyTorch eval-mode BN would use running_mean/running_var (and
    # training mode would also update them); this implements training-mode batch
    # statistics (biased variance) for the forward pass only.
    x_flat = xyz.reshape(M, Cin)
    tile_m = _pick_tile(M, cap=2048, align=8)

    sum_x, xtx = pl.pallas_call(
        _moments_kernel,
        out_shape=(jax.ShapeDtypeStruct((1, Cin), jnp.float32),
                   jax.ShapeDtypeStruct((Cin, Cin), jnp.float32)),
        grid=(M // tile_m,),
        in_specs=[pl.BlockSpec((tile_m, Cin), lambda i: (i, 0))],
        out_specs=(pl.BlockSpec((1, Cin), lambda i: (0, 0)),
                   pl.BlockSpec((Cin, Cin), lambda i: (0, 0))),
        compiler_params=pltpu.CompilerParams(
            dimension_semantics=("arbitrary",)),   # accumulator across the grid
    )(x_flat)

    # Tiny per-channel math (pure JAX): recover BN stats of h = x@w1 + b1 from the
    # x-moments, then fold scale/shift into conv1 and pre-transpose all weights so
    # pass 2 runs entirely in the output (NCL) layout.
    s1 = sum_x @ w1                                             # (1, F)
    mean = s1 / M + b1                                          # (1, F)
    quad = jnp.sum(w1 * (xtx @ w1), axis=0, keepdims=True)      # (1, F)
    var = jnp.maximum(quad / M - (s1 / M) ** 2, 0.0)            # biased batch var
    scale = gamma * lax.rsqrt(var + eps)                        # (1, F)
    w1t = (w1 * scale).T                                        # (F, Cin)
    b1c = ((b1 - mean) * scale + beta).T                        # (F, 1)
    w2t = w2.T                                                  # (F, F)
    b2c = b2.T                                                  # (F, 1)

    # ----------- Pass 2: fused conv1 -> BN -> ReLU -> conv2, NCL output ------
    tile_n = _pick_tile(N, cap=2048, align=128)
    out = pl.pallas_call(
        _fused_kernel,
        out_shape=jax.ShapeDtypeStruct((B, F, N), jnp.float32),
        grid=(B, N // tile_n),
        in_specs=[
            pl.BlockSpec((1, tile_n, Cin), lambda b, n: (b, n, 0)),
            pl.BlockSpec((F, Cin), lambda b, n: (0, 0)),
            pl.BlockSpec((F, 1), lambda b, n: (0, 0)),
            pl.BlockSpec((F, F), lambda b, n: (0, 0)),
            pl.BlockSpec((F, 1), lambda b, n: (0, 0)),
        ],
        out_specs=pl.BlockSpec((1, F, tile_n), lambda b, n: (b, 0, n)),
        compiler_params=pltpu.CompilerParams(
            dimension_semantics=("parallel", "parallel")),      # megacore on v7x
    )(xyz, w1t, b1c, w2t, b2c)
    return out


# --------------------------------------------------------------------------- #
# Params / reference / test
# --------------------------------------------------------------------------- #
def init_params(key, input_channel, num_pos_feats):
    k1, k2, k3, k4 = jax.random.split(key, 4)
    # Conv1d weights in PyTorch are (out_ch, in_ch, 1); kept here in (in_ch, out_ch)
    # matmul form. Deterministic synthetic init.
    w1 = jax.random.normal(k1, (input_channel, num_pos_feats), jnp.float32) * 0.1
    b1 = jax.random.normal(k2, (1, num_pos_feats), jnp.float32) * 0.1
    w2 = jax.random.normal(k3, (num_pos_feats, num_pos_feats), jnp.float32) * 0.1
    b2 = jax.random.normal(k4, (1, num_pos_feats), jnp.float32) * 0.1
    gamma = jnp.ones((1, num_pos_feats), jnp.float32)   # BN weight init
    beta = jnp.zeros((1, num_pos_feats), jnp.float32)   # BN bias init
    return {"w1": w1, "b1": b1, "gamma": gamma, "beta": beta, "w2": w2, "b2": b2}


def _reference(xyz, params, eps=1e-5):
    # Pure-JAX reference of the same forward (training-mode BN, biased variance).
    B, N, Cin = xyz.shape
    x = xyz.reshape(B * N, Cin)
    h = x @ params["w1"] + params["b1"]
    mean = h.mean(axis=0, keepdims=True)
    var = ((h - mean) ** 2).mean(axis=0, keepdims=True)
    h = (h - mean) / jnp.sqrt(var + eps) * params["gamma"] + params["beta"]
    h = jnp.maximum(h, 0.0)
    out = h @ params["w2"] + params["b2"]
    F = params["w1"].shape[1]
    return out.reshape(B, N, F).transpose(0, 2, 1)


if __name__ == "__main__":
    key = jax.random.PRNGKey(0)
    k_in, k_par, k_in2, k_par2 = jax.random.split(key, 4)

    # Small shapes consistent with the module's forward.
    B, N, Cin, num_pos_feats = 2, 16, 4, 32
    xyz = jax.random.normal(k_in, (B, N, Cin), jnp.float32)      # (B, N, Cin)
    params = init_params(k_par, Cin, num_pos_feats)

    out = jax.block_until_ready(position_embedding_learned(xyz, params))
    ref = _reference(xyz, params)
    assert out.shape == (B, num_pos_feats, N), out.shape
    assert jnp.allclose(out, ref, atol=1e-4, rtol=1e-4), "mismatch vs reference"

    # Larger shape exercising the tiled/pipelined path (multi-tile grid + BN
    # moment accumulator across grid steps).
    B2, N2, Cin2 = 2, 4096, 3
    xyz2 = jax.random.normal(k_in2, (B2, N2, Cin2), jnp.float32)
    params2 = init_params(k_par2, Cin2, num_pos_feats)
    out2 = jax.block_until_ready(position_embedding_learned(xyz2, params2))
    ref2 = _reference(xyz2, params2)
    assert out2.shape == (B2, num_pos_feats, N2), out2.shape
    assert jnp.allclose(out2, ref2, atol=1e-3, rtol=1e-3), "mismatch (tiled path)"

    print("KERNEL_OK")
</pallas_src>

<mosaic_0001>
module attributes {stable_mosaic.version = 11 : i64} {
  func.func @_moments_kernel(%arg0: i32, %arg1: memref<32x4xf32, #tpu.memory_space<vmem>>, %arg2: memref<1x4xf32, #tpu.memory_space<vmem>>, %arg3: memref<4x4xf32, #tpu.memory_space<vmem>>) attributes {dimension_semantics = [#tpu.dimension_semantics<arbitrary>], iteration_bounds = array<i64: 1>, scalar_prefetch = 0 : i64, scratch_operands = 0 : i64, tpu.core_type = #tpu.core_type<tc>, window_params = [{transform_indices = @transform_0, window_bounds = array<i64: 32, 4>}, {pipeline_mode = #tpu.pipeline_mode<synchronous>, transform_indices = @transform_1, window_bounds = array<i64: 1, 4>}, {pipeline_mode = #tpu.pipeline_mode<synchronous>, transform_indices = @transform_2, window_bounds = array<i64: 4, 4>}]} {
    %c0_i32 = arith.constant 0 : i32
    %0 = arith.cmpi eq, %arg0, %c0_i32 : i32
    %1 = arith.extui %0 : i1 to i32
    %c0_i32_0 = arith.constant 0 : i32
    %2 = arith.cmpi ne, %1, %c0_i32_0 : i32
    scf.if %2 {
      %cst_11 = arith.constant 0.000000e+00 : f32
      %13 = vector.broadcast %cst_11 : f32 to vector<1x4xf32>
      %c0_12 = arith.constant 0 : index
      %c0_13 = arith.constant 0 : index
      %14 = vector.load %arg2[%c0_12, %c0_13] : memref<1x4xf32, #tpu.memory_space<vmem>>, vector<1x4xf32>
      tpu.vector_store %arg2[%c0_12, %c0_13], %13 {strides = array<i32>} : memref<1x4xf32, #tpu.memory_space<vmem>>, vector<1x4xf32>,
      %cst_14 = arith.constant 0.000000e+00 : f32
      %15 = vector.broadcast %cst_14 : f32 to vector<4x4xf32>
      %c0_15 = arith.constant 0 : index
      %c0_16 = arith.constant 0 : index
      %16 = vector.load %arg3[%c0_15, %c0_16] : memref<4x4xf32, #tpu.memory_space<vmem>>, vector<4x4xf32>
      tpu.vector_store %arg3[%c0_15, %c0_16], %15 {strides = array<i32>} : memref<4x4xf32, #tpu.memory_space<vmem>>, vector<4x4xf32>,
    } else {
    }
    %c0 = arith.constant 0 : index
    %c0_1 = arith.constant 0 : index
    %3 = vector.load %arg1[%c0, %c0_1] : memref<32x4xf32, #tpu.memory_space<vmem>>, vector<32x4xf32>
    %c0_2 = arith.constant 0 : index
    %c0_3 = arith.constant 0 : index
    %4 = vector.load %arg2[%c0_2, %c0_3] : memref<1x4xf32, #tpu.memory_space<vmem>>, vector<1x4xf32>
    %cst = arith.constant dense<0.000000e+00> : vector<4xf32>
    %5 = vector.multi_reduction <add>, %3, %cst [0] : vector<32x4xf32> to vector<4xf32>
    %6 = vector.shape_cast %5 : vector<4xf32> to vector<1x4xf32>
    %7 = arith.addf %4, %6 : vector<1x4xf32>
    %c0_4 = arith.constant 0 : index
    %c0_5 = arith.constant 0 : index
    %8 = vector.load %arg2[%c0_4, %c0_5] : memref<1x4xf32, #tpu.memory_space<vmem>>, vector<1x4xf32>
    tpu.vector_store %arg2[%c0_4, %c0_5], %7 {strides = array<i32>} : memref<1x4xf32, #tpu.memory_space<vmem>>, vector<1x4xf32>,
    %c0_6 = arith.constant 0 : index
    %c0_7 = arith.constant 0 : index
    %9 = vector.load %arg3[%c0_6, %c0_7] : memref<4x4xf32, #tpu.memory_space<vmem>>, vector<4x4xf32>
    %cst_8 = arith.constant dense<0.000000e+00> : vector<4x4xf32>
    %10 = tpu.matmul %3, %3, %cst_8 {dimension_numbers = #tpu.dot_dimension_numbers<[0], [0], [1], [1], [0, 1, 1, 1], [], []>} : vector<32x4xf32>, vector<32x4xf32>, vector<4x4xf32> -> vector<4x4xf32>
    %11 = arith.addf %9, %10 : vector<4x4xf32>
    %c0_9 = arith.constant 0 : index
    %c0_10 = arith.constant 0 : index
    %12 = vector.load %arg3[%c0_9, %c0_10] : memref<4x4xf32, #tpu.memory_space<vmem>>, vector<4x4xf32>
    tpu.vector_store %arg3[%c0_9, %c0_10], %11 {strides = array<i32>} : memref<4x4xf32, #tpu.memory_space<vmem>>, vector<4x4xf32>,
    return
  }
  func.func @transform_0(%arg0: i32) -> (i32, i32) {
    %c0_i32 = arith.constant 0 : i32
    %c0_i32_0 = arith.constant 0 : i32
    return %arg0, %c0_i32 : i32, i32
  }
  func.func @transform_1(%arg0: i32) -> (i32, i32) {
    %c0_i32 = arith.constant 0 : i32
    %c0_i32_0 = arith.constant 0 : i32
    %c0_i32_1 = arith.constant 0 : i32
    return %c0_i32, %c0_i32_0 : i32, i32
  }
  func.func @transform_2(%arg0: i32) -> (i32, i32) {
    %c0_i32 = arith.constant 0 : i32
    %c0_i32_0 = arith.constant 0 : i32
    %c0_i32_1 = arith.constant 0 : i32
    return %c0_i32, %c0_i32_0 : i32, i32
  }
}

</mosaic_0001>

<bundles_post_ra>
// kernel: tpu_custom_call.1
= control target key start
LH: loop header
LB: loop body
LE: loop exit
PB: predicated region body
PF: predicated region fallthrough
CT: control target
= control target key end

     0   :  { %8 = vsyncpa [#allocation3], 0  ;;  %vm25_vm0 = vcmask 31744   ;;  %v256_v6 = vmov 0.0|0.0   ;;  %vm16_vm1 = vcmask 24576   ;;  %s316_s0 = inlined_call_operand.vmem [shape: f32[32,4], index: 0, kind: input, shape index: {}]   ;;  %s317_s1 = inlined_call_operand.hbm [shape: f32[1,4], index: 1, kind: output, shape index: {0}]   ;;  %s318_s2 = inlined_call_operand.hbm [shape: f32[4,4], index: 2, kind: output, shape index: {1}]  }
   0x1   :  { %v20_v0 = vld [vmem:[%s316_s0] sm:$0xff]  ;;  %v21_v1 = vld [vmem:[%s316_s0 + $0x8] sm:$0xff]  ;;  %v22_v2 = vld [vmem:[%s316_s0 + $0x10] sm:$0xff]  ;;  %197 = vmatprep.subr.bf16.mxu0 %v256_v6 }
   0x2   :  { %43 = vxpose.xlu0.b32.start [1/4] (short) (narrow) %v20_v0, 8  ;;  %v26_v3 = vsel %vm25_vm0, %v20_v0, 0.0  ;;  %v27_v4 = vsel %vm25_vm0, %v21_v1, 0.0  ;;  %v29_v5 = vsel %vm25_vm0, %v22_v2, 0.0  ;;  %v198_v7 = vpack.c.bf16 %v21_v1, %v20_v0  ;;  %v23_v9 = vld [vmem:[%s316_s0 + $0x18] sm:$0xff] }
   0x3   :  { %v28_v8 = vadd.f32 %v27_v4, %v26_v3 }
   0x4   :  { %9 = vsyncpa [#allocation5], 0  ;;  %v31_v10 = vsel %vm25_vm0, %v23_v9, 0.0  ;;  %199 = vmatpush3.bf16.msra.mxu0 %v198_v7  ;;  %v201_v11 = vpack.c.bf16 %v23_v9, %v22_v2  ;;  %v257_v12 = vmov 0.0   ;;  %vm18_vm2 = vcmask 27648   ;;  %s259_s0 = smov [#allocation2]  }
   0x5   :  { %17 = vst.msk [vmem:[#allocation2] sm:$0x1] %vm16_vm1, %v257_v12  ;;  %v30_v13 = vadd.f32 %v29_v5, %v28_v8  ;;  %200 = vmatprep.subr.bf16.mxu0 %v256_v6  ;;  %vm258_vm3 = vmmov 0   ;;  %vm75_vm4 = vcmask 261120   ;;  %s158_s17 = sshll.u32 %s259_s0, 4  ;;  %s159_s17 = int_to_ptr.vmem [resolvable:$true] %s158_s17 }
   0x6   :  { %19 = vst.msk [vmem:[#allocation4] sm:$0xf] %vm18_vm2, %v257_v12  ;;  %194 = vmatprep.mubr.msk.f32.mxu0 %vm258_vm3, %v257_v12  ;;  %44 = vxpose.xlu0.b32.cont [2/4] (short) (narrow) %v21_v1, 8  ;;  %s208_s18 = scalar_lea.vmem %s159_s17, 16  ;;  %s212_s19 = scalar_lea.vmem %s159_s17, 32 }
   0x7   :  { %v32_v14 = vadd.f32 %v31_v10, %v30_v13  ;;  %p209_p0 = scmp.ne.s32.totalorder %s159_s17, %s208_s18  ;;  %p213_p1 = scmp.lt.s32.totalorder %s159_s17, %s159_s17 }
   0x8   :  { %202 = vmatpush3.bf16.msra.mxu0 %v201_v11  ;;  %p214_p2 = scmp.lt.s32.totalorder %s212_s19, %s208_s18 }
   0x9   :  { %v33_v16 = vrot.slane %v32_v14, 4 }
   0xa   :  { %45 = vxpose.xlu0.b32.cont [3/4] (short) (narrow) %v22_v2, 8  ;;  %p215_p3 = por %p214_p2, %p213_p1 }
   0xb   :  { %v34_v17 = vadd.f32 %v33_v16, %v32_v14 }
   0xc   :  { %v24_v22 = vld [vmem:[#allocation2] sm:$0x1]  ;;  %p216_p4 = pnand %p215_p3, %p209_p0 }
   0xd   :  { %v35_v18 = vrot.slane %v34_v17, 2 }
   0xe   :  { %46 = vxpose.xlu0.b32.end [4/4] (short) (narrow) %v23_v9, 8 }
   0xf   :  { %v36_v19 = vadd.f32 %v35_v18, %v34_v17 }
  0x11   :  { %v37_v20 = vrot.slane %v36_v19, 1 }
  0x13   :  { %v38_v21 = vadd.f32 %v37_v20, %v36_v19 }
  0x15   :  { %v39_v23 = vadd.f32 %v38_v21, %v24_v22 }
  0x17   :  { %41 = vst.msk [vmem:[#allocation2] sm:$0x1] %vm16_vm1, %v39_v23 }
  0x82   :  { %v59_v15 = vpop.trf.xlu0 }
  0x83   :  { %195 = vmatmul.mubr.msk.f32.vlgmr.msra.gmra.mrb[0].mxu0 %vm75_vm4, %v59_v15 }
  0x84   :  { %219 = shalt.err (!%p216_p4)
}
  0x85   :  { %s220_s22 = scalar_lea.hbm %s317_s1, 16 }
  0x86   :  { %p221_p5 = scmp.ne.s32.totalorder %s317_s1, %s220_s22  ;;  %p224_p6 = scmp.lt.u32.totalorder %s220_s22, %s317_s1 }
  0x88   :  { %p226_p7 = pnand %p224_p6, %p221_p5 }
  0x8a   :  { %229 = shalt.err (!%p226_p7)
}
  0x8b   :  { %161 = dma.vmem_to_hbm [thread:$0]  %s159_s17, 16, %s317_s1, [#allocation3]   ;;  %v42_v24 = vld [vmem:[#allocation4] sm:$0xf] }
  0x8c   :  { %s260_s29 = smov [#allocation4]  }
  0x8d   :  { %s168_s30 = sshll.u32 %s260_s29, 4  ;;  %s169_s30 = int_to_ptr.vmem [resolvable:$true] %s168_s30 }
  0x8e   :  { %s230_s3 = scalar_lea.vmem %s169_s30, 64  ;;  %p235_p9 = scmp.lt.s32.totalorder %s169_s30, %s169_s30 }
  0x8f   :  { %p231_p8 = scmp.ne.s32.totalorder %s169_s30, %s230_s3  ;;  %p236_p10 = scmp.lt.s32.totalorder %s230_s3, %s230_s3 }
  0x91   :  { %p237_p11 = por %p236_p10, %p235_p9 }
  0x93   :  { %p238_p12 = pnand %p237_p11, %p231_p8 }
 0x156   :  { %v145_v25 = vpop.f32.mrb[0].mxu0 }
 0x157   :  { %v149_v26 = vadd.f32 %v145_v25, %v42_v24  ;;  %v196_v27 = vpop.f32.mrb[1].mxu0 }
 0x159   :  { %151 = vst.msk [vmem:[#allocation4] sm:$0xf] %vm18_vm2, %v149_v26 }
 0x15a   :  { %241 = shalt.err (!%p238_p12)
}
 0x15b   :  { %s242_s1 = scalar_lea.hbm %s318_s2, 64 }
 0x15c   :  { %p243_p13 = scmp.ne.s32.totalorder %s318_s2, %s242_s1  ;;  %p246_p0 = scmp.lt.u32.totalorder %s242_s1, %s318_s2 }
 0x15e   :  { %p248_p1 = pnand %p246_p0, %p243_p13 }
 0x160   :  { %251 = shalt.err (!%p248_p1)
}
 0x161   :  { %171 = dma.vmem_to_hbm [thread:$0]  %s169_s30, 64, %s318_s2, [#allocation5]  }
 0x162   :  { %252 = dma.done.wait [#allocation3], 16  }
 0x163   :  { %253 = vsyncadd [#allocation3], 4294967280 }
 0x164   :  { %254 = dma.done.wait [#allocation5], 64  }
 0x165   :  { %255 = vsyncadd [#allocation5], 4294967232 }
 0x166   :  { %178 = vsyncpa [#allocation3], 1 }
 0x167   :  { %179 = vsyncpa [#allocation5], 1 }

</bundles_post_ra>
